<compile_context>
chip_gen: v7x
topology: tpu7x:2x2x1
jax: 0.10.0
libtpu: 0.0.40
codegen_flags: <defaults>
</compile_context>

<pallas_src>
import math

import jax
import jax.numpy as jnp
from jax import lax
from jax.experimental import pallas as pl
from jax.experimental.pallas import tpu as pltpu


def _lora_matmul_kernel(a_ref, b_ref, o_ref):
    # a_ref: (TM, r)  -- tile of lora_a^T
    # b_ref: (TN, r)  -- tile of lora_b
    # out tile = a_tile @ b_tile^T : contract the minor (r) axis of both.
    o_ref[...] = lax.dot_general(
        a_ref[...],
        b_ref[...],
        dimension_numbers=(((1,), (1,)), ((), ())),
        preferred_element_type=jnp.float32,
    ).astype(o_ref.dtype)


def _pick_tile(dim: int, target: int, align: int) -> int:
    """Largest `align`-aligned tile <= target that divides dim (full dim if small)."""
    if dim <= target:
        return dim  # full-extent block is always a legal block shape
    t = (target // align) * align
    while t >= align:
        if dim % t == 0:
            return t
        t -= align
    return dim  # fallback: full dim (always legal)


def lora_forward(lora_a: jax.Array, lora_b: jax.Array, *, tm: int = 512,
                 tn: int = 2048) -> jax.Array:
    """Computes lora_a.T @ lora_b.T -> (in_features, out_features)."""
    r, in_features = lora_a.shape
    out_features, rb = lora_b.shape
    assert r == rb, "rank mismatch between lora_a and lora_b"

    # One-time wrapper transpose: present (M, r) so the kernel contracts the
    # minor axis of both operands (no in-kernel transpose).
    a_t = lora_a.T  # (in_features, r)

    tm = _pick_tile(in_features, tm, 8)     # sublane-aligned row blocks
    tn = _pick_tile(out_features, tn, 128)  # lane-dense output stores
    grid = (in_features // tm, out_features // tn)

    return pl.pallas_call(
        _lora_matmul_kernel,
        out_shape=jax.ShapeDtypeStruct((in_features, out_features),
                                       lora_a.dtype),
        grid=grid,
        in_specs=[
            # A tile depends only on i -> re-DMA only when the row block
            # changes; B tile depends only on j and is tiny (TN * r * 4 B).
            pl.BlockSpec((tm, r), lambda i, j: (i, 0)),
            pl.BlockSpec((tn, r), lambda i, j: (j, 0)),
        ],
        out_specs=pl.BlockSpec((tm, tn), lambda i, j: (i, j)),
        compiler_params=pltpu.CompilerParams(
            # No carried accumulator: both axes independent -> megacore-able.
            dimension_semantics=("parallel", "parallel"),
        ),
    )(a_t, lora_b)


def init_lora_params(key, in_features: int, out_features: int, r: int):
    """Deterministic init matching LoRAModule.reset_parameters()."""
    # nn.init.kaiming_uniform_(lora_a, a=sqrt(5)):
    #   gain  = sqrt(2 / (1 + a^2)) = sqrt(1/3)
    #   fan_in of (r, in_features) = in_features
    #   bound = gain * sqrt(3 / fan_in) = 1 / sqrt(in_features)
    bound = 1.0 / math.sqrt(in_features)
    lora_a = jax.random.uniform(
        key, (r, in_features), dtype=jnp.float32, minval=-bound, maxval=bound
    )
    # nn.init.zeros_(lora_b)
    lora_b = jnp.zeros((out_features, r), dtype=jnp.float32)
    return lora_a, lora_b


if __name__ == "__main__":
    # Small-but-tiled demo shapes: 2x2 output grid with tm=256, tn=512.
    in_features = 512
    out_features = 1024
    r = 16

    key = jax.random.PRNGKey(0)
    k_init, k_b = jax.random.split(key)

    # 1) PyTorch-faithful init (lora_b is zeros -> output is all zeros).
    lora_a, lora_b = init_lora_params(k_init, in_features, out_features, r)
    out0 = jax.block_until_ready(lora_forward(lora_a, lora_b, tm=256, tn=512))
    assert out0.shape == (in_features, out_features), out0.shape
    assert jnp.allclose(out0, jnp.zeros_like(out0)), "zero-init mismatch"

    # 2) Non-trivial check: random non-zero lora_b so the matmul is exercised
    #    (the zero-init case would pass regardless of matmul correctness).
    lora_b_nz = jax.random.normal(k_b, (out_features, r), dtype=jnp.float32)
    out = jax.block_until_ready(lora_forward(lora_a, lora_b_nz, tm=256, tn=512))
    ref = lora_a.T @ lora_b_nz.T
    assert out.shape == (in_features, out_features), out.shape
    assert jnp.allclose(out, ref, atol=1e-3, rtol=1e-3), "mismatch vs reference"

    print("KERNEL_OK")
</pallas_src>

<mosaic_0001>
module attributes {stable_mosaic.version = 11 : i64} {
  func.func @_lora_matmul_kernel(%arg0: i32, %arg1: i32, %arg2: memref<256x16xf32, #tpu.memory_space<vmem>>, %arg3: memref<512x16xf32, #tpu.memory_space<vmem>>, %arg4: memref<256x512xf32, #tpu.memory_space<vmem>>) attributes {dimension_semantics = [#tpu.dimension_semantics<parallel>, #tpu.dimension_semantics<parallel>], iteration_bounds = array<i64: 2, 2>, scalar_prefetch = 0 : i64, scratch_operands = 0 : i64, tpu.core_type = #tpu.core_type<tc>, window_params = [{transform_indices = @transform_0, window_bounds = array<i64: 256, 16>}, {transform_indices = @transform_1, window_bounds = array<i64: 512, 16>}, {transform_indices = @transform_2, window_bounds = array<i64: 256, 512>}]} {
    %c0 = arith.constant 0 : index
    %c0_0 = arith.constant 0 : index
    %0 = vector.load %arg2[%c0, %c0_0] : memref<256x16xf32, #tpu.memory_space<vmem>>, vector<256x16xf32>
    %c0_1 = arith.constant 0 : index
    %c0_2 = arith.constant 0 : index
    %1 = vector.load %arg3[%c0_1, %c0_2] : memref<512x16xf32, #tpu.memory_space<vmem>>, vector<512x16xf32>
    %cst = arith.constant dense<0.000000e+00> : vector<256x512xf32>
    %2 = tpu.matmul %0, %1, %cst {dimension_numbers = #tpu.dot_dimension_numbers<[1], [1], [0], [0], [0, 0, 1, 0], [], []>} : vector<256x16xf32>, vector<512x16xf32>, vector<256x512xf32> -> vector<256x512xf32>
    %c0_3 = arith.constant 0 : index
    %c0_4 = arith.constant 0 : index
    %3 = vector.load %arg4[%c0_3, %c0_4] : memref<256x512xf32, #tpu.memory_space<vmem>>, vector<256x512xf32>
    tpu.vector_store %arg4[%c0_3, %c0_4], %2 {strides = array<i32>} : memref<256x512xf32, #tpu.memory_space<vmem>>, vector<256x512xf32>,
    return
  }
  func.func @transform_0(%arg0: i32, %arg1: i32) -> (i32, i32) {
    %c0_i32 = arith.constant 0 : i32
    %c0_i32_0 = arith.constant 0 : i32
    return %arg0, %c0_i32 : i32, i32
  }
  func.func @transform_1(%arg0: i32, %arg1: i32) -> (i32, i32) {
    %c0_i32 = arith.constant 0 : i32
    %c0_i32_0 = arith.constant 0 : i32
    return %arg1, %c0_i32 : i32, i32
  }
  func.func @transform_2(%arg0: i32, %arg1: i32) -> (i32, i32) {
    %c0_i32 = arith.constant 0 : i32
    return %arg0, %arg1 : i32, i32
  }
}

</mosaic_0001>

<bundles_post_ra>
// kernel: tpu_custom_call.1
= control target key start
LH: loop header
LB: loop body
LE: loop exit
PB: predicated region body
PF: predicated region fallthrough
CT: control target
= control target key end

     0   :  { %7 = vsyncpa [#allocation3], 0  ;;  %s2517_s0 = inlined_call_operand.vmem [shape: f32[512,16], index: 0, kind: input, shape index: {}]   ;;  %s2518_s1 = inlined_call_operand.vmem [shape: f32[1024,16], index: 1, kind: input, shape index: {}]   ;;  %s2519_s2 = inlined_call_operand.hbm [shape: f32[512,1024], index: 2, kind: output, shape index: {}]  }
   0x1   :  { %9 = vsyncpa [#allocation3 + $0x1], 0  ;;  %s1937_s9 = smov 0   ;;  %s1939_s10 = smov 0  }
   0x2   :  { %s1941_s11 = smov 0   ;;  %s1943_s12 = smov 0  }
   0x3   :  { %s1945_s13 = smov 0   ;;  %s1947_s14 = smov 0  }
   0x4   :  { %s1949_s15 = smov 0   ;;  %s1951_s16 = smov 0  }
   0x5 LB: > { %s1314_s17 = sadd.s32 4294967295, %s1916_s16   ;;  %s1315_s18 = sadd.s32 4294967294, %s1916_s16   ;;  %s1916_s16 = sphi %s1951_s16, %s15_s16   ;;  %s1912_s15 = sphi %s1949_s15, %s2530_s15   ;;  %s1908_s14 = sphi %s1947_s14, %s2529_s14   ;;  %s1904_s13 = sphi %s1945_s13, %s2528_s13   ;;  %s1900_s12 = sphi %s1943_s12, %s2527_s12   ;;  %s1896_s11 = sphi %s1941_s11, %s2526_s11   ;;  %s1892_s10 = sphi %s1939_s10, %s2525_s10   ;;  %s1888_s9 = sphi %s1937_s9, %s2524_s9  }
   0x6   : > { %s24_s19 = sadd.s32 1, %s1908_s14  ;;  %s27_s20 = sadd.s32 1, %s1912_s15 }
   0x7   : > { %p25_p0 = scmp.ge.s32.totalorder %s24_s19, 2  ;;  %p98_p1 = scmp.ne.s32.totalorder %s1896_s11, %s1892_s10 }
   0x8   : > { %p99_p2 = scmp.eq.s32.totalorder %s1314_s17, 3  ;;  %p104_p5 = scmp.ne.s32.totalorder %s1892_s10, %s1888_s9 }
   0x9   : > { %s2532_s19 = smov (%p25_p0, %s24_s19), 0  ;;  %s2534_s20 = smov (!%p25_p0, %s27_s20), %s1912_s15 }
   0xa   : > { %s84_s21 = ssub.s32 %s1908_s14, %s2532_s19  ;;  %p1988_p3 = por %p99_p2, %p98_p1 }
   0xb   : > { %p29_p4 = scmp.ge.s32.totalorder %s2534_s20, 2  ;;  %p105_p6 = scmp.eq.s32.totalorder %s1315_s18, 3 }
   0xc   : > { %p1318_p7 = scmp.ge.s32.totalorder %s1916_s16, 1  ;;  %p141_p9 = scmp.lt.s32.totalorder %s1916_s16, 5 }
   0xd   : > { %s2536_s20 = smov (%p29_p4, %s2534_s20), 0  ;;  %p1997_p8 = por %p105_p6, %p104_p5 }
   0xe   : > { %s83_s24 = ssub.s32 %s1912_s15, %s2536_s20  ;;  %s88_s25 = sadd.s32 1, %s1896_s11 }
   0xf   : > { %s85_s26 = sor.u32 %s84_s21, %s83_s24  ;;  %p142_p10 = pnand %p1318_p7, %p141_p9 }
  0x10   : > { %p86_p11 = scmp.eq.s32.totalorder %s85_s26, 0  ;;  %s1322_s28 = sshll.u32 (!%p142_p10), %s1900_s12, 6  ;;  %vm278_vm0 = vcmask (!%p142_p10), 130048  }
  0x11   : > { %145 = sbr.rel (%p142_p10) target bundleno = 449 (0x1c1), region = 28  ;;  %p175_p12 = scmp.lt.s32.totalorder (!%p142_p10), %s1322_s28, 127  ;;  %vm2016_vm1 = vmpackc.low (!%p142_p10), %vm278_vm0, %vm278_vm0 }
  0x12   : > { %s2006_s27 = scalar_select %p86_p11, %s1896_s11, %s88_s25  }
  0x13   : > { %s1320_s5 = sshll.u32 (!%p142_p10), %s1904_s13, 5  ;;  %s165_s18 = sand.u32 (!%p142_p10), 1, %s1892_s10  }
  0x14   : > { %p169_p13 = scmp.lt.s32.totalorder (!%p142_p10), %s1320_s5, 63  ;;  %s1319_s21 = sshll.u32 (!%p142_p10), %s165_s18, 10 }
  0x15   : > { %s2323_s24 = scalar_lea.vmem (!%p142_p10), [#allocation2], %s1319_s21  ;;  %s1454_s25 = sshll.u32 (!%p142_p10), %s1900_s12, 2 }
  0x16   : > { %s1459_s26 = sshll.u32 (!%p142_p10), %s1904_s13, 8  ;;  %s1226_s12 = sshll.u32 (!%p142_p10), %s2323_s24, 4  ;;  %s2457_s12 = int_to_ptr.vmem [resolvable:$true] %s1226_s12 }
  0x18   : > { %s2538_s28 = smov (!%p175_p12, %s1322_s28), 127  ;;  %s2540_s5 = smov (!%p169_p13, %s1320_s5), 63 }
  0x19   : > { %s1323_s29 = sshll.u32 %s2538_s28, 3  ;;  %s1321_s6 = sshll.u32 %s2540_s5, 3 }
  0x1a   : > { %s2012_s4 = scalar_lea.vmem %s2518_s1, %s1323_s29  ;;  %s2072_s17 = scalar_lea.vmem %s2517_s0, %s1321_s6 }
  0x1b   : > { %v230_v1 = vld [vmem:[%s2012_s4 + $0x80] sm:$0xff]  ;;  %v231_v2 = vld [vmem:[%s2012_s4 + $0x88] sm:$0xff]  ;;  %v232_v12 = vld [vmem:[%s2012_s4 + $0x90] sm:$0xff]  ;;  %s1223_s28 = sadd.s32 %s1459_s26, %s1454_s25  ;;  %s1822_s5 = scalar_lea.vmem %s2457_s12, 16384 }
  0x1c   : > { %v262_v3 = vld [vmem:[%s2012_s4 + $0x180] sm:$0xff]  ;;  %v1652_v4 = vpack.c.bf16 %v231_v2, %v230_v1  ;;  %v263_v5 = vld [vmem:[%s2012_s4 + $0x188] sm:$0xff]  ;;  %v233_v14 = vld [vmem:[%s2012_s4 + $0x98] sm:$0xff]  ;;  %s1456_s29 = sshll.u32 %s1223_s28, 7  ;;  %p1823_p0 = scmp.ne.s32.totalorder %s2457_s12, %s1822_s5 }
  0x1d   : > { %v214_v6 = vld [vmem:[%s2012_s4] sm:$0xff]  ;;  %v215_v7 = vld [vmem:[%s2012_s4 + $0x8] sm:$0xff]  ;;  %v1700_v8 = vpack.c.bf16 %v263_v5, %v262_v3  ;;  %v264_v15 = vld [vmem:[%s2012_s4 + $0x190] sm:$0xff]  ;;  %v1658_v17 = vpack.c.bf16 %v233_v14, %v232_v12  ;;  %s2455_s3 = scalar_lea.hbm %s2519_s2, %s1456_s29  ;;  %s1918_s6 = smov [#allocation2]  }
  0x1e   : > { %v1655_v9 = vpack.c.bf16 %v215_v7, %v214_v6  ;;  %v246_v10 = vld [vmem:[%s2012_s4 + $0x100] sm:$0xff]  ;;  %v247_v11 = vld [vmem:[%s2012_s4 + $0x108] sm:$0xff]  ;;  %1654 = vmatprep.subr.msk.bf16.mxu0 %vm2016_vm1, %v1652_v4  ;;  %v265_v16 = vld [vmem:[%s2012_s4 + $0x198] sm:$0xff]  ;;  %p1824_p1 = pnand %p1823_p0, %p1988_p3  ;;  %s1826_s7 = sshll.u32 %s1918_s6, 4  ;;  %s1827_s7 = int_to_ptr.vmem [resolvable:$false] %s1826_s7 }
  0x1f   : > { %v1703_v13 = vpack.c.bf16 %v247_v11, %v246_v10  ;;  %1702 = vmatprep.subr.msk.bf16.mxu1 %vm2016_vm1, %v1700_v8  ;;  %v1706_v18 = vpack.c.bf16 %v265_v16, %v264_v15  ;;  %v216_v19 = vld [vmem:[%s2012_s4 + $0x10] sm:$0xff]  ;;  %v217_v20 = vld [vmem:[%s2012_s4 + $0x18] sm:$0xff]  ;;  %v234_v23 = vld [vmem:[%s2012_s4 + $0xa0] sm:$0xff]  ;;  %s1828_s8 = scalar_lea.vmem %s1827_s7, 32768  ;;  %p1829_p4 = scmp.lt.s32.totalorder %s2457_s12, %s1827_s7 }
  0x20   : > { %1657 = vmatpush3.bf16.xpose.msk.msra.mxu0 %vm2016_vm1, %v1655_v9  ;;  %v248_v21 = vld [vmem:[%s2012_s4 + $0x110] sm:$0xff]  ;;  %v249_v22 = vld [vmem:[%s2012_s4 + $0x118] sm:$0xff]  ;;  %v235_v24 = vld [vmem:[%s2012_s4 + $0xa8] sm:$0xff]  ;;  %v1661_v27 = vpack.c.bf16 %v217_v20, %v216_v19  ;;  %p1825_p2 = pneg %p1824_p1  ;;  %p1830_p5 = scmp.lt.s32.totalorder %s1828_s8, %s1822_s5 }
  0x21   : > { %1705 = vmatpush3.bf16.xpose.msk.msra.mxu1 %vm2016_vm1, %v1703_v13  ;;  %1660 = vmatprep.subr.msk.bf16.mxu0 %vm2016_vm1, %v1658_v17  ;;  %v266_v25 = vld [vmem:[%s2012_s4 + $0x1a0] sm:$0xff]  ;;  %v267_v26 = vld [vmem:[%s2012_s4 + $0x1a8] sm:$0xff]  ;;  %v1709_v28 = vpack.c.bf16 %v249_v22, %v248_v21  ;;  %v1664_v29 = vpack.c.bf16 %v235_v24, %v234_v23  ;;  %v236_v35 = vld [vmem:[%s2012_s4 + $0xb0] sm:$0xff] }
  0x22   : > { %1708 = vmatprep.subr.msk.bf16.mxu1 %vm2016_vm1, %v1706_v18  ;;  %v1712_v30 = vpack.c.bf16 %v267_v26, %v266_v25  ;;  %v218_v31 = vld [vmem:[%s2012_s4 + $0x20] sm:$0xff]  ;;  %v219_v32 = vld [vmem:[%s2012_s4 + $0x28] sm:$0xff]  ;;  %v237_v36 = vld [vmem:[%s2012_s4 + $0xb8] sm:$0xff]  ;;  %p1831_p6 = por %p1830_p5, %p1829_p4 }
  0x23   : > { %v250_v33 = vld [vmem:[%s2012_s4 + $0x120] sm:$0xff]  ;;  %v251_v34 = vld [vmem:[%s2012_s4 + $0x128] sm:$0xff]  ;;  %v268_v37 = vld [vmem:[%s2012_s4 + $0x1b0] sm:$0xff]  ;;  %v1667_v39 = vpack.c.bf16 %v219_v32, %v218_v31  ;;  %v1670_v41 = vpack.c.bf16 %v237_v36, %v236_v35 }
  0x24   : > { %v269_v38 = vld [vmem:[%s2012_s4 + $0x1b8] sm:$0xff]  ;;  %v1715_v40 = vpack.c.bf16 %v251_v34, %v250_v33  ;;  %v220_v43 = vld [vmem:[%s2012_s4 + $0x30] sm:$0xff]  ;;  %v2084_v46 = vld [vmem:[%s2072_s17] sm:$0xff]  ;;  %p1832_p7 = pnand %p1831_p6, %p1825_p2 }
  0x25   : > { %v1718_v42 = vpack.c.bf16 %v269_v38, %v268_v37  ;;  %v221_v44 = vld [vmem:[%s2012_s4 + $0x38] sm:$0xff]  ;;  %v252_v45 = vld [vmem:[%s2012_s4 + $0x130] sm:$0xff]  ;;  %v238_v48 = vld [vmem:[%s2012_s4 + $0xc0] sm:$0xff]  ;;  %1492 = vmatprep.mubr.msk.f32.mxu0 %vm278_vm0, %v2084_v46  ;;  %1588 = vmatprep.mubr.msk.f32.mxu1 %vm278_vm0, %v2084_v46 }
  0x26   : > { %v253_v47 = vld [vmem:[%s2012_s4 + $0x138] sm:$0xff]  ;;  %v239_v49 = vld [vmem:[%s2012_s4 + $0xc8] sm:$0xff]  ;;  %v270_v50 = vld [vmem:[%s2012_s4 + $0x1c0] sm:$0xff]  ;;  %v1673_v52 = vpack.c.bf16 %v221_v44, %v220_v43 }
  0x27   : > { %v271_v51 = vld [vmem:[%s2012_s4 + $0x1c8] sm:$0xff]  ;;  %v1721_v53 = vpack.c.bf16 %v253_v47, %v252_v45  ;;  %v1676_v54 = vpack.c.bf16 %v239_v49, %v238_v48  ;;  %v222_v56 = vld [vmem:[%s2012_s4 + $0x40] sm:$0xff]  ;;  %v240_v60 = vld [vmem:[%s2012_s4 + $0xd0] sm:$0xff] }
  0x28   : > { %1663 = vmatpush3.bf16.xpose.msk.msra.mxu0 %vm2016_vm1, %v1661_v27  ;;  %v1724_v55 = vpack.c.bf16 %v271_v51, %v270_v50  ;;  %v223_v57 = vld [vmem:[%s2012_s4 + $0x48] sm:$0xff]  ;;  %v254_v58 = vld [vmem:[%s2012_s4 + $0x140] sm:$0xff]  ;;  %v241_v61 = vld [vmem:[%s2012_s4 + $0xd8] sm:$0xff] }
  0x29   : > { %1711 = vmatpush3.bf16.xpose.msk.msra.mxu1 %vm2016_vm1, %v1709_v28  ;;  %1666 = vmatprep.subr.msk.bf16.mxu0 %vm2016_vm1, %v1664_v29  ;;  %v255_v59 = vld [vmem:[%s2012_s4 + $0x148] sm:$0xff]  ;;  %v272_v62 = vld [vmem:[%s2012_s4 + $0x1d0] sm:$0xff]  ;;  %v273_v63 = vld [vmem:[%s2012_s4 + $0x1d8] sm:$0xff]  ;;  %v1679_v1 = vpack.c.bf16 %v223_v57, %v222_v56  ;;  %v1682_v3 = vpack.c.bf16 %v241_v61, %v240_v60 }
  0x2a   : > { %1714 = vmatprep.subr.msk.bf16.mxu1 %vm2016_vm1, %v1712_v30  ;;  %v1727_v2 = vpack.c.bf16 %v255_v59, %v254_v58  ;;  %v1730_v4 = vpack.c.bf16 %v273_v63, %v272_v62  ;;  %v224_v5 = vld [vmem:[%s2012_s4 + $0x50] sm:$0xff]  ;;  %v225_v6 = vld [vmem:[%s2012_s4 + $0x58] sm:$0xff]  ;;  %v242_v9 = vld [vmem:[%s2012_s4 + $0xe0] sm:$0xff] }
  0x2b   : > { %v256_v7 = vld [vmem:[%s2012_s4 + $0x150] sm:$0xff]  ;;  %v257_v8 = vld [vmem:[%s2012_s4 + $0x158] sm:$0xff]  ;;  %v243_v10 = vld [vmem:[%s2012_s4 + $0xe8] sm:$0xff]  ;;  %v1685_v13 = vpack.c.bf16 %v225_v6, %v224_v5 }
  0x2c   : > { %v274_v11 = vld [vmem:[%s2012_s4 + $0x1e0] sm:$0xff]  ;;  %v275_v12 = vld [vmem:[%s2012_s4 + $0x1e8] sm:$0xff]  ;;  %v1733_v14 = vpack.c.bf16 %v257_v8, %v256_v7  ;;  %v1688_v15 = vpack.c.bf16 %v243_v10, %v242_v9  ;;  %v244_v21 = vld [vmem:[%s2012_s4 + $0xf0] sm:$0xff] }
  0x2d   : > { %v1736_v16 = vpack.c.bf16 %v275_v12, %v274_v11  ;;  %v226_v17 = vld [vmem:[%s2012_s4 + $0x60] sm:$0xff]  ;;  %v227_v18 = vld [vmem:[%s2012_s4 + $0x68] sm:$0xff]  ;;  %v245_v22 = vld [vmem:[%s2012_s4 + $0xf8] sm:$0xff] }
  0x2e   : > { %v258_v19 = vld [vmem:[%s2012_s4 + $0x160] sm:$0xff]  ;;  %v259_v20 = vld [vmem:[%s2012_s4 + $0x168] sm:$0xff]  ;;  %v276_v23 = vld [vmem:[%s2012_s4 + $0x1f0] sm:$0xff]  ;;  %v1691_v25 = vpack.c.bf16 %v227_v18, %v226_v17  ;;  %v1694_v27 = vpack.c.bf16 %v245_v22, %v244_v21 }
  0x2f   : > { %v277_v24 = vld [vmem:[%s2012_s4 + $0x1f8] sm:$0xff]  ;;  %v1739_v26 = vpack.c.bf16 %v259_v20, %v258_v19  ;;  %v228_v29 = vld [vmem:[%s2012_s4 + $0x70] sm:$0xff]  ;;  %v183_v35 = vld [vmem:[%s2072_s17 + $0x8] sm:$0xff] }
  0x30   : > { %1669 = vmatpush3.bf16.xpose.msk.msra.mxu0 %vm2016_vm1, %v1667_v39  ;;  %v1742_v28 = vpack.c.bf16 %v277_v24, %v276_v23  ;;  %v229_v30 = vld [vmem:[%s2012_s4 + $0x78] sm:$0xff]  ;;  %v260_v31 = vld [vmem:[%s2012_s4 + $0x170] sm:$0xff]  ;;  %v186_v37 = vld [vmem:[%s2072_s17 + $0x20] sm:$0xff] }
  0x31   : > { %1717 = vmatpush3.bf16.xpose.msk.msra.mxu1 %vm2016_vm1, %v1715_v40  ;;  %1672 = vmatprep.subr.msk.bf16.mxu0 %vm2016_vm1, %v1670_v41  ;;  %v261_v32 = vld [vmem:[%s2012_s4 + $0x178] sm:$0xff]  ;;  %v1697_v33 = vpack.c.bf16 %v229_v30, %v228_v29  ;;  %v184_v36 = vld [vmem:[%s2072_s17 + $0x10] sm:$0xff]  ;;  %v187_v38 = vld [vmem:[%s2072_s17 + $0x28] sm:$0xff]  ;;  %s2465_s4 = scalar_lea.sflag [#allocation3], %s165_s18 }
  0x32   : > { %1720 = vmatprep.subr.msk.bf16.mxu1 %vm2016_vm1, %v1718_v42  ;;  %v1745_v34 = vpack.c.bf16 %v261_v32, %v260_v31  ;;  %v185_v0 = vld [vmem:[%s2072_s17 + $0x18] sm:$0xff]  ;;  %v188_v39 = vld [vmem:[%s2072_s17 + $0x30] sm:$0xff]  ;;  %v190_v41 = vld [vmem:[%s2072_s17 + $0x40] sm:$0xff] }
  0x33   : > { %v189_v40 = vld [vmem:[%s2072_s17 + $0x38] sm:$0xff]  ;;  %v191_v42 = vld [vmem:[%s2072_s17 + $0x48] sm:$0xff]  ;;  %v192_v43 = vld [vmem:[%s2072_s17 + $0x50] sm:$0xff] }
  0x34   : > { %v193_v44 = vld [vmem:[%s2072_s17 + $0x58] sm:$0xff]  ;;  %v194_v45 = vld [vmem:[%s2072_s17 + $0x60] sm:$0xff]  ;;  %v196_v47 = vld [vmem:[%s2072_s17 + $0x70] sm:$0xff] }
  0x35   : > { %v197_v48 = vld [vmem:[%s2072_s17 + $0x78] sm:$0xff]  ;;  %v198_v49 = vld [vmem:[%s2072_s17 + $0x80] sm:$0xff]  ;;  %v199_v50 = vld [vmem:[%s2072_s17 + $0x88] sm:$0xff] }
  0x36   : > { %v200_v51 = vld [vmem:[%s2072_s17 + $0x90] sm:$0xff]  ;;  %v205_v56 = vld [vmem:[%s2072_s17 + $0xb8] sm:$0xff]  ;;  %v206_v57 = vld [vmem:[%s2072_s17 + $0xc0] sm:$0xff] }
  0x37   : > { %v207_v58 = vld [vmem:[%s2072_s17 + $0xc8] sm:$0xff]  ;;  %v208_v59 = vld [vmem:[%s2072_s17 + $0xd0] sm:$0xff]  ;;  %v209_v60 = vld [vmem:[%s2072_s17 + $0xd8] sm:$0xff] }
  0x38   : > { %1675 = vmatpush3.bf16.xpose.msk.msra.mxu0 %vm2016_vm1, %v1673_v52  ;;  %v201_v52 = vld [vmem:[%s2072_s17 + $0x98] sm:$0xff]  ;;  %v210_v61 = vld [vmem:[%s2072_s17 + $0xe0] sm:$0xff]  ;;  %v211_v62 = vld [vmem:[%s2072_s17 + $0xe8] sm:$0xff] }
  0x39   : > { %1723 = vmatpush3.bf16.xpose.msk.msra.mxu1 %vm2016_vm1, %v1721_v53  ;;  %1678 = vmatprep.subr.msk.bf16.mxu0 %vm2016_vm1, %v1676_v54  ;;  %v202_v53 = vld [vmem:[%s2072_s17 + $0xa0] sm:$0xff]  ;;  %v203_v54 = vld [vmem:[%s2072_s17 + $0xa8] sm:$0xff]  ;;  %v212_v63 = vld [vmem:[%s2072_s17 + $0xf0] sm:$0xff] }
  0x3a   : > { %1726 = vmatprep.subr.msk.bf16.mxu1 %vm2016_vm1, %v1724_v55  ;;  %v204_v55 = vld [vmem:[%s2072_s17 + $0xb0] sm:$0xff] }
  0x40   : > { %1681 = vmatpush3.bf16.xpose.msk.msra.mxu0 %vm2016_vm1, %v1679_v1  ;;  %v213_v1 = vld [vmem:[%s2072_s17 + $0xf8] sm:$0xff] }
  0x41   : > { %1729 = vmatpush3.bf16.xpose.msk.msra.mxu1 %vm2016_vm1, %v1727_v2  ;;  %1684 = vmatprep.subr.msk.bf16.mxu0 %vm2016_vm1, %v1682_v3 }
  0x42   : > { %1732 = vmatprep.subr.msk.bf16.mxu1 %vm2016_vm1, %v1730_v4 }
  0x48   : > { %1687 = vmatpush3.bf16.xpose.msk.msra.mxu0 %vm2016_vm1, %v1685_v13 }
  0x49   : > { %1735 = vmatpush3.bf16.xpose.msk.msra.mxu1 %vm2016_vm1, %v1733_v14  ;;  %1690 = vmatprep.subr.msk.bf16.mxu0 %vm2016_vm1, %v1688_v15 }
  0x4a   : > { %1738 = vmatprep.subr.msk.bf16.mxu1 %vm2016_vm1, %v1736_v16 }
  0x50   : > { %1693 = vmatpush3.bf16.xpose.msk.msra.mxu0 %vm2016_vm1, %v1691_v25 }
  0x51   : > { %1741 = vmatpush3.bf16.xpose.msk.msra.mxu1 %vm2016_vm1, %v1739_v26  ;;  %1696 = vmatprep.subr.msk.bf16.mxu0 %vm2016_vm1, %v1694_v27 }
  0x52   : > { %1744 = vmatprep.subr.msk.bf16.mxu1 %vm2016_vm1, %v1742_v28 }
  0x58   : > { %1699 = vmatpush3.bf16.xpose.msk.msra.mxu0 %vm2016_vm1, %v1697_v33 }
  0x59   : > { %1747 = vmatpush3.bf16.xpose.msk.msra.mxu1 %vm2016_vm1, %v1745_v34 }
  0x5f   : > { %1493 = vmatmul.mubr.msk.f32.vlgmr.msra.gmra.mrb[0].mxu0 %vm278_vm0, %v2084_v46 }
  0x60   : > { %1589 = vmatmul.mubr.msk.f32.vlgmr.msra.gmra.mrb[0].mxu1 %vm278_vm0, %v2084_v46  ;;  %1494 = vmatprep.mubr.msk.f32.mxu0 %vm278_vm0, %v183_v35  ;;  %v195_v46 = vld [vmem:[%s2072_s17 + $0x68] sm:$0xff] }
  0x61   : > { %1590 = vmatprep.mubr.msk.f32.mxu1 %vm278_vm0, %v183_v35 }
  0x63   : > { %1495 = vmatmul.mubr.msk.f32.gmra.mrb[2].mxu0 %vm278_vm0, %v183_v35 }
  0x64   : > { %1591 = vmatmul.mubr.msk.f32.gmra.mrb[2].mxu1 %vm278_vm0, %v183_v35  ;;  %1496 = vmatprep.mubr.msk.f32.mxu0 %vm278_vm0, %v184_v36 }
  0x65   : > { %1592 = vmatprep.mubr.msk.f32.mxu1 %vm278_vm0, %v184_v36 }
  0x67   : > { %1497 = vmatmul.mubr.msk.f32.gmra.mrb[4].mxu0 %vm278_vm0, %v184_v36 }
  0x68   : > { %1593 = vmatmul.mubr.msk.f32.gmra.mrb[4].mxu1 %vm278_vm0, %v184_v36  ;;  %1498 = vmatprep.mubr.msk.f32.mxu0 %vm278_vm0, %v185_v0 }
  0x69   : > { %1594 = vmatprep.mubr.msk.f32.mxu1 %vm278_vm0, %v185_v0 }
  0x6b   : > { %1499 = vmatmul.mubr.msk.f32.gmra.mrb[6].mxu0 %vm278_vm0, %v185_v0 }
  0x6c   : > { %1595 = vmatmul.mubr.msk.f32.gmra.mrb[6].mxu1 %vm278_vm0, %v185_v0  ;;  %1500 = vmatprep.mubr.msk.f32.mxu0 %vm278_vm0, %v186_v37 }
  0x6d   : > { %1596 = vmatprep.mubr.msk.f32.mxu1 %vm278_vm0, %v186_v37 }
  0x6f   : > { %1501 = vmatmul.mubr.msk.f32.gmra.mrb[8].mxu0 %vm278_vm0, %v186_v37 }
  0x70   : > { %1597 = vmatmul.mubr.msk.f32.gmra.mrb[8].mxu1 %vm278_vm0, %v186_v37  ;;  %1502 = vmatprep.mubr.msk.f32.mxu0 %vm278_vm0, %v187_v38 }
  0x71   : > { %1598 = vmatprep.mubr.msk.f32.mxu1 %vm278_vm0, %v187_v38 }
  0x73   : > { %1503 = vmatmul.mubr.msk.f32.gmra.mrb[10].mxu0 %vm278_vm0, %v187_v38 }
  0x74   : > { %1599 = vmatmul.mubr.msk.f32.gmra.mrb[10].mxu1 %vm278_vm0, %v187_v38  ;;  %1504 = vmatprep.mubr.msk.f32.mxu0 %vm278_vm0, %v188_v39 }
  0x75   : > { %1600 = vmatprep.mubr.msk.f32.mxu1 %vm278_vm0, %v188_v39 }
  0x77   : > { %1505 = vmatmul.mubr.msk.f32.gmra.mrb[12].mxu0 %vm278_vm0, %v188_v39 }
  0x78   : > { %1601 = vmatmul.mubr.msk.f32.gmra.mrb[12].mxu1 %vm278_vm0, %v188_v39  ;;  %1506 = vmatprep.mubr.msk.f32.mxu0 %vm278_vm0, %v189_v40 }
  0x79   : > { %1602 = vmatprep.mubr.msk.f32.mxu1 %vm278_vm0, %v189_v40 }
  0x7b   : > { %1507 = vmatmul.mubr.msk.f32.gmra.mrb[14].mxu0 %vm278_vm0, %v189_v40 }
  0x7c   : > { %1603 = vmatmul.mubr.msk.f32.gmra.mrb[14].mxu1 %vm278_vm0, %v189_v40  ;;  %1508 = vmatprep.mubr.msk.f32.mxu0 %vm278_vm0, %v190_v41 }
  0x7d   : > { %1604 = vmatprep.mubr.msk.f32.mxu1 %vm278_vm0, %v190_v41 }
  0x7f   : > { %1509 = vmatmul.mubr.msk.f32.gmra.mrb[16].mxu0 %vm278_vm0, %v190_v41 }
  0x80   : > { %1605 = vmatmul.mubr.msk.f32.gmra.mrb[16].mxu1 %vm278_vm0, %v190_v41  ;;  %1510 = vmatprep.mubr.msk.f32.mxu0 %vm278_vm0, %v191_v42 }
  0x81   : > { %1606 = vmatprep.mubr.msk.f32.mxu1 %vm278_vm0, %v191_v42 }
  0x83   : > { %1511 = vmatmul.mubr.msk.f32.gmra.mrb[18].mxu0 %vm278_vm0, %v191_v42 }
  0x84   : > { %1607 = vmatmul.mubr.msk.f32.gmra.mrb[18].mxu1 %vm278_vm0, %v191_v42  ;;  %1512 = vmatprep.mubr.msk.f32.mxu0 %vm278_vm0, %v192_v43 }
  0x85   : > { %1608 = vmatprep.mubr.msk.f32.mxu1 %vm278_vm0, %v192_v43 }
  0x87   : > { %1513 = vmatmul.mubr.msk.f32.gmra.mrb[20].mxu0 %vm278_vm0, %v192_v43 }
  0x88   : > { %1609 = vmatmul.mubr.msk.f32.gmra.mrb[20].mxu1 %vm278_vm0, %v192_v43  ;;  %1514 = vmatprep.mubr.msk.f32.mxu0 %vm278_vm0, %v193_v44 }
  0x89   : > { %1610 = vmatprep.mubr.msk.f32.mxu1 %vm278_vm0, %v193_v44 }
  0x8b   : > { %1515 = vmatmul.mubr.msk.f32.gmra.mrb[22].mxu0 %vm278_vm0, %v193_v44 }
  0x8c   : > { %1611 = vmatmul.mubr.msk.f32.gmra.mrb[22].mxu1 %vm278_vm0, %v193_v44  ;;  %1516 = vmatprep.mubr.msk.f32.mxu0 %vm278_vm0, %v194_v45 }
  0x8d   : > { %1612 = vmatprep.mubr.msk.f32.mxu1 %vm278_vm0, %v194_v45 }
  0x8f   : > { %1517 = vmatmul.mubr.msk.f32.gmra.mrb[24].mxu0 %vm278_vm0, %v194_v45 }
  0x90   : > { %1613 = vmatmul.mubr.msk.f32.gmra.mrb[24].mxu1 %vm278_vm0, %v194_v45  ;;  %1518 = vmatprep.mubr.msk.f32.mxu0 %vm278_vm0, %v195_v46 }
  0x91   : > { %1614 = vmatprep.mubr.msk.f32.mxu1 %vm278_vm0, %v195_v46 }
  0x93   : > { %1519 = vmatmul.mubr.msk.f32.gmra.mrb[26].mxu0 %vm278_vm0, %v195_v46 }
  0x94   : > { %1615 = vmatmul.mubr.msk.f32.gmra.mrb[26].mxu1 %vm278_vm0, %v195_v46  ;;  %1520 = vmatprep.mubr.msk.f32.mxu0 %vm278_vm0, %v196_v47 }
  0x95   : > { %1616 = vmatprep.mubr.msk.f32.mxu1 %vm278_vm0, %v196_v47 }
  0x97   : > { %1521 = vmatmul.mubr.msk.f32.gmra.mrb[28].mxu0 %vm278_vm0, %v196_v47 }
  0x98   : > { %1617 = vmatmul.mubr.msk.f32.gmra.mrb[28].mxu1 %vm278_vm0, %v196_v47  ;;  %1522 = vmatprep.mubr.msk.f32.mxu0 %vm278_vm0, %v197_v48 }
  0x99   : > { %1618 = vmatprep.mubr.msk.f32.mxu1 %vm278_vm0, %v197_v48 }
  0x9b   : > { %1523 = vmatmul.mubr.msk.f32.gmra.mrb[30].mxu0 %vm278_vm0, %v197_v48 }
  0x9c   : > { %1619 = vmatmul.mubr.msk.f32.gmra.mrb[30].mxu1 %vm278_vm0, %v197_v48  ;;  %1524 = vmatprep.mubr.msk.f32.mxu0 %vm278_vm0, %v198_v49 }
  0x9d   : > { %1620 = vmatprep.mubr.msk.f32.mxu1 %vm278_vm0, %v198_v49 }
  0x9f   : > { %1525 = vmatmul.mubr.msk.f32.gmra.mrb[32].mxu0 %vm278_vm0, %v198_v49 }
  0xa0   : > { %1621 = vmatmul.mubr.msk.f32.gmra.mrb[32].mxu1 %vm278_vm0, %v198_v49  ;;  %1526 = vmatprep.mubr.msk.f32.mxu0 %vm278_vm0, %v199_v50 }
  0xa1   : > { %1622 = vmatprep.mubr.msk.f32.mxu1 %vm278_vm0, %v199_v50 }
  0xa3   : > { %1527 = vmatmul.mubr.msk.f32.gmra.mrb[34].mxu0 %vm278_vm0, %v199_v50 }
  0xa4   : > { %1623 = vmatmul.mubr.msk.f32.gmra.mrb[34].mxu1 %vm278_vm0, %v199_v50  ;;  %1528 = vmatprep.mubr.msk.f32.mxu0 %vm278_vm0, %v200_v51 }
  0xa5   : > { %1624 = vmatprep.mubr.msk.f32.mxu1 %vm278_vm0, %v200_v51 }
  0xa7   : > { %1529 = vmatmul.mubr.msk.f32.gmra.mrb[36].mxu0 %vm278_vm0, %v200_v51 }
  0xa8   : > { %1625 = vmatmul.mubr.msk.f32.gmra.mrb[36].mxu1 %vm278_vm0, %v200_v51  ;;  %1530 = vmatprep.mubr.msk.f32.mxu0 %vm278_vm0, %v201_v52 }
  0xa9   : > { %1626 = vmatprep.mubr.msk.f32.mxu1 %vm278_vm0, %v201_v52 }
  0xab   : > { %1531 = vmatmul.mubr.msk.f32.gmra.mrb[38].mxu0 %vm278_vm0, %v201_v52 }
  0xac   : > { %1627 = vmatmul.mubr.msk.f32.gmra.mrb[38].mxu1 %vm278_vm0, %v201_v52  ;;  %1532 = vmatprep.mubr.msk.f32.mxu0 %vm278_vm0, %v202_v53 }
  0xad   : > { %1628 = vmatprep.mubr.msk.f32.mxu1 %vm278_vm0, %v202_v53 }
  0xaf   : > { %1533 = vmatmul.mubr.msk.f32.gmra.mrb[40].mxu0 %vm278_vm0, %v202_v53 }
  0xb0   : > { %1629 = vmatmul.mubr.msk.f32.gmra.mrb[40].mxu1 %vm278_vm0, %v202_v53  ;;  %1534 = vmatprep.mubr.msk.f32.mxu0 %vm278_vm0, %v203_v54 }
  0xb1   : > { %1630 = vmatprep.mubr.msk.f32.mxu1 %vm278_vm0, %v203_v54 }
  0xb3   : > { %1535 = vmatmul.mubr.msk.f32.gmra.mrb[42].mxu0 %vm278_vm0, %v203_v54 }
  0xb4   : > { %1631 = vmatmul.mubr.msk.f32.gmra.mrb[42].mxu1 %vm278_vm0, %v203_v54  ;;  %1536 = vmatprep.mubr.msk.f32.mxu0 %vm278_vm0, %v204_v55 }
  0xb5   : > { %1632 = vmatprep.mubr.msk.f32.mxu1 %vm278_vm0, %v204_v55 }
  0xb7   : > { %1537 = vmatmul.mubr.msk.f32.gmra.mrb[44].mxu0 %vm278_vm0, %v204_v55 }
  0xb8   : > { %1633 = vmatmul.mubr.msk.f32.gmra.mrb[44].mxu1 %vm278_vm0, %v204_v55  ;;  %1538 = vmatprep.mubr.msk.f32.mxu0 %vm278_vm0, %v205_v56 }
  0xb9   : > { %1634 = vmatprep.mubr.msk.f32.mxu1 %vm278_vm0, %v205_v56 }
  0xbb   : > { %1539 = vmatmul.mubr.msk.f32.gmra.mrb[46].mxu0 %vm278_vm0, %v205_v56 }
  0xbc   : > { %1635 = vmatmul.mubr.msk.f32.gmra.mrb[46].mxu1 %vm278_vm0, %v205_v56  ;;  %1540 = vmatprep.mubr.msk.f32.mxu0 %vm278_vm0, %v206_v57 }
  0xbd   : > { %1636 = vmatprep.mubr.msk.f32.mxu1 %vm278_vm0, %v206_v57 }
  0xbf   : > { %1541 = vmatmul.mubr.msk.f32.gmra.mrb[48].mxu0 %vm278_vm0, %v206_v57 }
  0xc0   : > { %1637 = vmatmul.mubr.msk.f32.gmra.mrb[48].mxu1 %vm278_vm0, %v206_v57  ;;  %1542 = vmatprep.mubr.msk.f32.mxu0 %vm278_vm0, %v207_v58 }
  0xc1   : > { %1638 = vmatprep.mubr.msk.f32.mxu1 %vm278_vm0, %v207_v58 }
  0xc3   : > { %1543 = vmatmul.mubr.msk.f32.gmra.mrb[50].mxu0 %vm278_vm0, %v207_v58 }
  0xc4   : > { %1639 = vmatmul.mubr.msk.f32.gmra.mrb[50].mxu1 %vm278_vm0, %v207_v58  ;;  %1544 = vmatprep.mubr.msk.f32.mxu0 %vm278_vm0, %v208_v59 }
  0xc5   : > { %1640 = vmatprep.mubr.msk.f32.mxu1 %vm278_vm0, %v208_v59 }
  0xc7   : > { %1545 = vmatmul.mubr.msk.f32.gmra.mrb[52].mxu0 %vm278_vm0, %v208_v59 }
  0xc8   : > { %1641 = vmatmul.mubr.msk.f32.gmra.mrb[52].mxu1 %vm278_vm0, %v208_v59  ;;  %1546 = vmatprep.mubr.msk.f32.mxu0 %vm278_vm0, %v209_v60 }
  0xc9   : > { %1642 = vmatprep.mubr.msk.f32.mxu1 %vm278_vm0, %v209_v60 }
  0xcb   : > { %1547 = vmatmul.mubr.msk.f32.gmra.mrb[54].mxu0 %vm278_vm0, %v209_v60 }
  0xcc   : > { %1643 = vmatmul.mubr.msk.f32.gmra.mrb[54].mxu1 %vm278_vm0, %v209_v60  ;;  %1548 = vmatprep.mubr.msk.f32.mxu0 %vm278_vm0, %v210_v61 }
  0xcd   : > { %1644 = vmatprep.mubr.msk.f32.mxu1 %vm278_vm0, %v210_v61 }
  0xcf   : > { %1549 = vmatmul.mubr.msk.f32.gmra.mrb[56].mxu0 %vm278_vm0, %v210_v61 }
  0xd0   : > { %1645 = vmatmul.mubr.msk.f32.gmra.mrb[56].mxu1 %vm278_vm0, %v210_v61  ;;  %1550 = vmatprep.mubr.msk.f32.mxu0 %vm278_vm0, %v211_v62 }
  0xd1   : > { %1646 = vmatprep.mubr.msk.f32.mxu1 %vm278_vm0, %v211_v62 }
  0xd3   : > { %1551 = vmatmul.mubr.msk.f32.gmra.mrb[58].mxu0 %vm278_vm0, %v211_v62 }
  0xd4   : > { %1647 = vmatmul.mubr.msk.f32.gmra.mrb[58].mxu1 %vm278_vm0, %v211_v62  ;;  %1552 = vmatprep.mubr.msk.f32.mxu0 %vm278_vm0, %v212_v63 }
  0xd5   : > { %1648 = vmatprep.mubr.msk.f32.mxu1 %vm278_vm0, %v212_v63 }
  0xd7   : > { %1553 = vmatmul.mubr.msk.f32.gmra.mrb[60].mxu0 %vm278_vm0, %v212_v63 }
  0xd8   : > { %1649 = vmatmul.mubr.msk.f32.gmra.mrb[60].mxu1 %vm278_vm0, %v212_v63  ;;  %1554 = vmatprep.mubr.msk.f32.mxu0 %vm278_vm0, %v213_v1 }
  0xd9   : > { %1650 = vmatprep.mubr.msk.f32.mxu1 %vm278_vm0, %v213_v1 }
  0xdb   : > { %1555 = vmatmul.mubr.msk.f32.gmra.mrb[62].mxu0 %vm278_vm0, %v213_v1 }
  0xdc   : > { %1651 = vmatmul.mubr.msk.f32.gmra.mrb[62].mxu1 %vm278_vm0, %v213_v1 }
 0x132   : > { %v633_v2 = vpop.f32.mrb[0].mxu0 }
 0x133   : > { %1081 = vst [vmem:[%s2323_s24] sm:$0xff] %v633_v2  ;;  %v890_v3 = vpop.f32.mrb[0].mxu1  ;;  %v635_v4 = vpop.f32.mrb[1].mxu0 }
 0x134   : > { %1083 = vst [vmem:[%s2323_s24 + $0x10] sm:$0xff] %v890_v3  ;;  %1082 = vst [vmem:[%s2323_s24 + $0x8] sm:$0xff] %v635_v4  ;;  %v892_v5 = vpop.f32.mrb[1].mxu1 }
 0x135   : > { %1084 = vst [vmem:[%s2323_s24 + $0x18] sm:$0xff] %v892_v5 }
 0x136   : > { %v639_v6 = vpop.f32.mrb[2].mxu0 }
 0x137   : > { %1085 = vst [vmem:[%s2323_s24 + $0x20] sm:$0xff] %v639_v6  ;;  %v896_v7 = vpop.f32.mrb[2].mxu1  ;;  %v641_v8 = vpop.f32.mrb[3].mxu0 }
 0x138   : > { %1087 = vst [vmem:[%s2323_s24 + $0x30] sm:$0xff] %v896_v7  ;;  %1086 = vst [vmem:[%s2323_s24 + $0x28] sm:$0xff] %v641_v8  ;;  %v898_v9 = vpop.f32.mrb[3].mxu1 }
 0x139   : > { %1088 = vst [vmem:[%s2323_s24 + $0x38] sm:$0xff] %v898_v9 }
 0x13a   : > { %v645_v10 = vpop.f32.mrb[4].mxu0 }
 0x13b   : > { %1089 = vst [vmem:[%s2323_s24 + $0x40] sm:$0xff] %v645_v10  ;;  %v902_v11 = vpop.f32.mrb[4].mxu1  ;;  %v647_v12 = vpop.f32.mrb[5].mxu0 }
 0x13c   : > { %1091 = vst [vmem:[%s2323_s24 + $0x50] sm:$0xff] %v902_v11  ;;  %1090 = vst [vmem:[%s2323_s24 + $0x48] sm:$0xff] %v647_v12  ;;  %v904_v13 = vpop.f32.mrb[5].mxu1 }
 0x13d   : > { %1092 = vst [vmem:[%s2323_s24 + $0x58] sm:$0xff] %v904_v13 }
 0x13e   : > { %v651_v14 = vpop.f32.mrb[6].mxu0 }
 0x13f   : > { %1093 = vst [vmem:[%s2323_s24 + $0x60] sm:$0xff] %v651_v14  ;;  %v908_v15 = vpop.f32.mrb[6].mxu1  ;;  %v653_v16 = vpop.f32.mrb[7].mxu0 }
 0x140   : > { %1095 = vst [vmem:[%s2323_s24 + $0x70] sm:$0xff] %v908_v15  ;;  %1094 = vst [vmem:[%s2323_s24 + $0x68] sm:$0xff] %v653_v16  ;;  %v910_v17 = vpop.f32.mrb[7].mxu1 }
 0x141   : > { %1096 = vst [vmem:[%s2323_s24 + $0x78] sm:$0xff] %v910_v17 }
 0x142   : > { %v657_v18 = vpop.f32.mrb[8].mxu0 }
 0x143   : > { %1097 = vst [vmem:[%s2323_s24 + $0x80] sm:$0xff] %v657_v18  ;;  %v914_v19 = vpop.f32.mrb[8].mxu1  ;;  %v659_v20 = vpop.f32.mrb[9].mxu0 }
 0x144   : > { %1099 = vst [vmem:[%s2323_s24 + $0x90] sm:$0xff] %v914_v19  ;;  %1098 = vst [vmem:[%s2323_s24 + $0x88] sm:$0xff] %v659_v20  ;;  %v916_v21 = vpop.f32.mrb[9].mxu1 }
 0x145   : > { %1100 = vst [vmem:[%s2323_s24 + $0x98] sm:$0xff] %v916_v21 }
 0x146   : > { %v663_v22 = vpop.f32.mrb[10].mxu0 }
 0x147   : > { %1101 = vst [vmem:[%s2323_s24 + $0xa0] sm:$0xff] %v663_v22  ;;  %v920_v23 = vpop.f32.mrb[10].mxu1  ;;  %v665_v24 = vpop.f32.mrb[11].mxu0 }
 0x148   : > { %1103 = vst [vmem:[%s2323_s24 + $0xb0] sm:$0xff] %v920_v23  ;;  %1102 = vst [vmem:[%s2323_s24 + $0xa8] sm:$0xff] %v665_v24  ;;  %v922_v25 = vpop.f32.mrb[11].mxu1 }
 0x149   : > { %1104 = vst [vmem:[%s2323_s24 + $0xb8] sm:$0xff] %v922_v25 }
 0x14a   : > { %v669_v26 = vpop.f32.mrb[12].mxu0 }
 0x14b   : > { %1105 = vst [vmem:[%s2323_s24 + $0xc0] sm:$0xff] %v669_v26  ;;  %v926_v27 = vpop.f32.mrb[12].mxu1  ;;  %v671_v28 = vpop.f32.mrb[13].mxu0 }
 0x14c   : > { %1107 = vst [vmem:[%s2323_s24 + $0xd0] sm:$0xff] %v926_v27  ;;  %1106 = vst [vmem:[%s2323_s24 + $0xc8] sm:$0xff] %v671_v28  ;;  %v928_v29 = vpop.f32.mrb[13].mxu1 }
 0x14d   : > { %1108 = vst [vmem:[%s2323_s24 + $0xd8] sm:$0xff] %v928_v29 }
 0x14e   : > { %v675_v30 = vpop.f32.mrb[14].mxu0 }
 0x14f   : > { %1109 = vst [vmem:[%s2323_s24 + $0xe0] sm:$0xff] %v675_v30  ;;  %v932_v31 = vpop.f32.mrb[14].mxu1  ;;  %v677_v32 = vpop.f32.mrb[15].mxu0 }
 0x150   : > { %1111 = vst [vmem:[%s2323_s24 + $0xf0] sm:$0xff] %v932_v31  ;;  %1110 = vst [vmem:[%s2323_s24 + $0xe8] sm:$0xff] %v677_v32  ;;  %v934_v33 = vpop.f32.mrb[15].mxu1 }
 0x151   : > { %1112 = vst [vmem:[%s2323_s24 + $0xf8] sm:$0xff] %v934_v33 }
 0x152   : > { %v681_v34 = vpop.f32.mrb[16].mxu0 }
 0x153   : > { %1113 = vst [vmem:[%s2323_s24 + $0x100] sm:$0xff] %v681_v34  ;;  %v938_v35 = vpop.f32.mrb[16].mxu1  ;;  %v683_v36 = vpop.f32.mrb[17].mxu0 }
 0x154   : > { %1115 = vst [vmem:[%s2323_s24 + $0x110] sm:$0xff] %v938_v35  ;;  %1114 = vst [vmem:[%s2323_s24 + $0x108] sm:$0xff] %v683_v36  ;;  %v940_v0 = vpop.f32.mrb[17].mxu1 }
 0x155   : > { %1116 = vst [vmem:[%s2323_s24 + $0x118] sm:$0xff] %v940_v0 }
 0x156   : > { %v687_v37 = vpop.f32.mrb[18].mxu0 }
 0x157   : > { %1117 = vst [vmem:[%s2323_s24 + $0x120] sm:$0xff] %v687_v37  ;;  %v944_v38 = vpop.f32.mrb[18].mxu1  ;;  %v689_v39 = vpop.f32.mrb[19].mxu0 }
 0x158   : > { %1119 = vst [vmem:[%s2323_s24 + $0x130] sm:$0xff] %v944_v38  ;;  %1118 = vst [vmem:[%s2323_s24 + $0x128] sm:$0xff] %v689_v39  ;;  %v946_v40 = vpop.f32.mrb[19].mxu1 }
 0x159   : > { %1120 = vst [vmem:[%s2323_s24 + $0x138] sm:$0xff] %v946_v40 }
 0x15a   : > { %v693_v41 = vpop.f32.mrb[20].mxu0 }
 0x15b   : > { %1121 = vst [vmem:[%s2323_s24 + $0x140] sm:$0xff] %v693_v41  ;;  %v950_v42 = vpop.f32.mrb[20].mxu1  ;;  %v695_v43 = vpop.f32.mrb[21].mxu0 }
 0x15c   : > { %1123 = vst [vmem:[%s2323_s24 + $0x150] sm:$0xff] %v950_v42  ;;  %1122 = vst [vmem:[%s2323_s24 + $0x148] sm:$0xff] %v695_v43  ;;  %v952_v44 = vpop.f32.mrb[21].mxu1 }
 0x15d   : > { %1124 = vst [vmem:[%s2323_s24 + $0x158] sm:$0xff] %v952_v44 }
 0x15e   : > { %v699_v45 = vpop.f32.mrb[22].mxu0 }
 0x15f   : > { %1125 = vst [vmem:[%s2323_s24 + $0x160] sm:$0xff] %v699_v45  ;;  %v956_v46 = vpop.f32.mrb[22].mxu1  ;;  %v701_v47 = vpop.f32.mrb[23].mxu0 }
 0x160   : > { %1127 = vst [vmem:[%s2323_s24 + $0x170] sm:$0xff] %v956_v46  ;;  %1126 = vst [vmem:[%s2323_s24 + $0x168] sm:$0xff] %v701_v47  ;;  %v958_v48 = vpop.f32.mrb[23].mxu1 }
 0x161   : > { %1128 = vst [vmem:[%s2323_s24 + $0x178] sm:$0xff] %v958_v48 }
 0x162   : > { %v705_v49 = vpop.f32.mrb[24].mxu0 }
 0x163   : > { %1129 = vst [vmem:[%s2323_s24 + $0x180] sm:$0xff] %v705_v49  ;;  %v962_v50 = vpop.f32.mrb[24].mxu1  ;;  %v707_v51 = vpop.f32.mrb[25].mxu0 }
 0x164   : > { %1131 = vst [vmem:[%s2323_s24 + $0x190] sm:$0xff] %v962_v50  ;;  %1130 = vst [vmem:[%s2323_s24 + $0x188] sm:$0xff] %v707_v51  ;;  %v964_v52 = vpop.f32.mrb[25].mxu1 }
 0x165   : > { %1132 = vst [vmem:[%s2323_s24 + $0x198] sm:$0xff] %v964_v52 }
 0x166   : > { %v711_v53 = vpop.f32.mrb[26].mxu0 }
 0x167   : > { %1133 = vst [vmem:[%s2323_s24 + $0x1a0] sm:$0xff] %v711_v53  ;;  %v968_v54 = vpop.f32.mrb[26].mxu1  ;;  %v713_v55 = vpop.f32.mrb[27].mxu0 }
 0x168   : > { %1135 = vst [vmem:[%s2323_s24 + $0x1b0] sm:$0xff] %v968_v54  ;;  %1134 = vst [vmem:[%s2323_s24 + $0x1a8] sm:$0xff] %v713_v55  ;;  %v970_v56 = vpop.f32.mrb[27].mxu1 }
 0x169   : > { %1136 = vst [vmem:[%s2323_s24 + $0x1b8] sm:$0xff] %v970_v56 }
 0x16a   : > { %v717_v57 = vpop.f32.mrb[28].mxu0 }
 0x16b   : > { %1137 = vst [vmem:[%s2323_s24 + $0x1c0] sm:$0xff] %v717_v57  ;;  %v974_v58 = vpop.f32.mrb[28].mxu1  ;;  %v719_v59 = vpop.f32.mrb[29].mxu0 }
 0x16c   : > { %1139 = vst [vmem:[%s2323_s24 + $0x1d0] sm:$0xff] %v974_v58  ;;  %1138 = vst [vmem:[%s2323_s24 + $0x1c8] sm:$0xff] %v719_v59  ;;  %v976_v60 = vpop.f32.mrb[29].mxu1 }
 0x16d   : > { %1140 = vst [vmem:[%s2323_s24 + $0x1d8] sm:$0xff] %v976_v60 }
 0x16e   : > { %v723_v61 = vpop.f32.mrb[30].mxu0 }
 0x16f   : > { %1141 = vst [vmem:[%s2323_s24 + $0x1e0] sm:$0xff] %v723_v61  ;;  %v980_v62 = vpop.f32.mrb[30].mxu1  ;;  %v725_v63 = vpop.f32.mrb[31].mxu0 }
 0x170   : > { %1143 = vst [vmem:[%s2323_s24 + $0x1f0] sm:$0xff] %v980_v62  ;;  %1142 = vst [vmem:[%s2323_s24 + $0x1e8] sm:$0xff] %v725_v63  ;;  %v982_v1 = vpop.f32.mrb[31].mxu1 }
 0x171   : > { %1144 = vst [vmem:[%s2323_s24 + $0x1f8] sm:$0xff] %v982_v1 }
 0x172   : > { %v729_v2 = vpop.f32.mrb[32].mxu0 }
 0x173   : > { %1145 = vst [vmem:[%s2323_s24 + $0x200] sm:$0xff] %v729_v2  ;;  %v986_v3 = vpop.f32.mrb[32].mxu1  ;;  %v731_v4 = vpop.f32.mrb[33].mxu0 }
 0x174   : > { %1147 = vst [vmem:[%s2323_s24 + $0x210] sm:$0xff] %v986_v3  ;;  %1146 = vst [vmem:[%s2323_s24 + $0x208] sm:$0xff] %v731_v4  ;;  %v988_v5 = vpop.f32.mrb[33].mxu1 }
 0x175   : > { %1148 = vst [vmem:[%s2323_s24 + $0x218] sm:$0xff] %v988_v5 }
 0x176   : > { %v735_v6 = vpop.f32.mrb[34].mxu0 }
 0x177   : > { %1149 = vst [vmem:[%s2323_s24 + $0x220] sm:$0xff] %v735_v6  ;;  %v992_v7 = vpop.f32.mrb[34].mxu1  ;;  %v737_v8 = vpop.f32.mrb[35].mxu0 }
 0x178   : > { %1151 = vst [vmem:[%s2323_s24 + $0x230] sm:$0xff] %v992_v7  ;;  %1150 = vst [vmem:[%s2323_s24 + $0x228] sm:$0xff] %v737_v8  ;;  %v994_v9 = vpop.f32.mrb[35].mxu1 }
 0x179   : > { %1152 = vst [vmem:[%s2323_s24 + $0x238] sm:$0xff] %v994_v9 }
 0x17a   : > { %v741_v10 = vpop.f32.mrb[36].mxu0 }
 0x17b   : > { %1153 = vst [vmem:[%s2323_s24 + $0x240] sm:$0xff] %v741_v10  ;;  %v998_v11 = vpop.f32.mrb[36].mxu1  ;;  %v743_v12 = vpop.f32.mrb[37].mxu0 }
 0x17c   : > { %1155 = vst [vmem:[%s2323_s24 + $0x250] sm:$0xff] %v998_v11  ;;  %1154 = vst [vmem:[%s2323_s24 + $0x248] sm:$0xff] %v743_v12  ;;  %v1000_v13 = vpop.f32.mrb[37].mxu1 }
 0x17d   : > { %1156 = vst [vmem:[%s2323_s24 + $0x258] sm:$0xff] %v1000_v13 }
 0x17e   : > { %v747_v14 = vpop.f32.mrb[38].mxu0 }
 0x17f   : > { %1157 = vst [vmem:[%s2323_s24 + $0x260] sm:$0xff] %v747_v14  ;;  %v1004_v15 = vpop.f32.mrb[38].mxu1  ;;  %v749_v16 = vpop.f32.mrb[39].mxu0 }
 0x180   : > { %1159 = vst [vmem:[%s2323_s24 + $0x270] sm:$0xff] %v1004_v15  ;;  %1158 = vst [vmem:[%s2323_s24 + $0x268] sm:$0xff] %v749_v16  ;;  %v1006_v17 = vpop.f32.mrb[39].mxu1 }
 0x181   : > { %1160 = vst [vmem:[%s2323_s24 + $0x278] sm:$0xff] %v1006_v17 }
 0x182   : > { %v753_v18 = vpop.f32.mrb[40].mxu0 }
 0x183   : > { %1161 = vst [vmem:[%s2323_s24 + $0x280] sm:$0xff] %v753_v18  ;;  %v1010_v19 = vpop.f32.mrb[40].mxu1  ;;  %v755_v20 = vpop.f32.mrb[41].mxu0 }
 0x184   : > { %1163 = vst [vmem:[%s2323_s24 + $0x290] sm:$0xff] %v1010_v19  ;;  %1162 = vst [vmem:[%s2323_s24 + $0x288] sm:$0xff] %v755_v20  ;;  %v1012_v21 = vpop.f32.mrb[41].mxu1 }
 0x185   : > { %1164 = vst [vmem:[%s2323_s24 + $0x298] sm:$0xff] %v1012_v21 }
 0x186   : > { %v759_v22 = vpop.f32.mrb[42].mxu0 }
 0x187   : > { %1165 = vst [vmem:[%s2323_s24 + $0x2a0] sm:$0xff] %v759_v22  ;;  %v1016_v23 = vpop.f32.mrb[42].mxu1  ;;  %v761_v24 = vpop.f32.mrb[43].mxu0 }
 0x188   : > { %1167 = vst [vmem:[%s2323_s24 + $0x2b0] sm:$0xff] %v1016_v23  ;;  %1166 = vst [vmem:[%s2323_s24 + $0x2a8] sm:$0xff] %v761_v24  ;;  %v1018_v25 = vpop.f32.mrb[43].mxu1 }
 0x189   : > { %1168 = vst [vmem:[%s2323_s24 + $0x2b8] sm:$0xff] %v1018_v25 }
 0x18a   : > { %v765_v26 = vpop.f32.mrb[44].mxu0 }
 0x18b   : > { %1169 = vst [vmem:[%s2323_s24 + $0x2c0] sm:$0xff] %v765_v26  ;;  %v1022_v27 = vpop.f32.mrb[44].mxu1  ;;  %v767_v28 = vpop.f32.mrb[45].mxu0 }
 0x18c   : > { %1171 = vst [vmem:[%s2323_s24 + $0x2d0] sm:$0xff] %v1022_v27  ;;  %1170 = vst [vmem:[%s2323_s24 + $0x2c8] sm:$0xff] %v767_v28  ;;  %v1024_v29 = vpop.f32.mrb[45].mxu1 }
 0x18d   : > { %1172 = vst [vmem:[%s2323_s24 + $0x2d8] sm:$0xff] %v1024_v29 }
 0x18e   : > { %v771_v30 = vpop.f32.mrb[46].mxu0 }
 0x18f   : > { %1173 = vst [vmem:[%s2323_s24 + $0x2e0] sm:$0xff] %v771_v30  ;;  %v1028_v31 = vpop.f32.mrb[46].mxu1  ;;  %v773_v32 = vpop.f32.mrb[47].mxu0 }
 0x190   : > { %1175 = vst [vmem:[%s2323_s24 + $0x2f0] sm:$0xff] %v1028_v31  ;;  %1174 = vst [vmem:[%s2323_s24 + $0x2e8] sm:$0xff] %v773_v32  ;;  %v1030_v33 = vpop.f32.mrb[47].mxu1 }
 0x191   : > { %1176 = vst [vmem:[%s2323_s24 + $0x2f8] sm:$0xff] %v1030_v33 }
 0x192   : > { %v777_v34 = vpop.f32.mrb[48].mxu0 }
 0x193   : > { %1177 = vst [vmem:[%s2323_s24 + $0x300] sm:$0xff] %v777_v34  ;;  %v1034_v35 = vpop.f32.mrb[48].mxu1  ;;  %v779_v36 = vpop.f32.mrb[49].mxu0 }
 0x194   : > { %1179 = vst [vmem:[%s2323_s24 + $0x310] sm:$0xff] %v1034_v35  ;;  %1178 = vst [vmem:[%s2323_s24 + $0x308] sm:$0xff] %v779_v36  ;;  %v1036_v0 = vpop.f32.mrb[49].mxu1 }
 0x195   : > { %1180 = vst [vmem:[%s2323_s24 + $0x318] sm:$0xff] %v1036_v0 }
 0x196   : > { %v783_v37 = vpop.f32.mrb[50].mxu0 }
 0x197   : > { %1181 = vst [vmem:[%s2323_s24 + $0x320] sm:$0xff] %v783_v37  ;;  %v1040_v38 = vpop.f32.mrb[50].mxu1  ;;  %v785_v39 = vpop.f32.mrb[51].mxu0 }
 0x198   : > { %1183 = vst [vmem:[%s2323_s24 + $0x330] sm:$0xff] %v1040_v38  ;;  %1182 = vst [vmem:[%s2323_s24 + $0x328] sm:$0xff] %v785_v39  ;;  %v1042_v40 = vpop.f32.mrb[51].mxu1 }
 0x199   : > { %1184 = vst [vmem:[%s2323_s24 + $0x338] sm:$0xff] %v1042_v40 }
 0x19a   : > { %v789_v41 = vpop.f32.mrb[52].mxu0 }
 0x19b   : > { %1185 = vst [vmem:[%s2323_s24 + $0x340] sm:$0xff] %v789_v41  ;;  %v1046_v42 = vpop.f32.mrb[52].mxu1  ;;  %v791_v43 = vpop.f32.mrb[53].mxu0 }
 0x19c   : > { %1187 = vst [vmem:[%s2323_s24 + $0x350] sm:$0xff] %v1046_v42  ;;  %1186 = vst [vmem:[%s2323_s24 + $0x348] sm:$0xff] %v791_v43  ;;  %v1048_v44 = vpop.f32.mrb[53].mxu1 }
 0x19d   : > { %1188 = vst [vmem:[%s2323_s24 + $0x358] sm:$0xff] %v1048_v44 }
 0x19e   : > { %v795_v45 = vpop.f32.mrb[54].mxu0 }
 0x19f   : > { %1189 = vst [vmem:[%s2323_s24 + $0x360] sm:$0xff] %v795_v45  ;;  %v1052_v46 = vpop.f32.mrb[54].mxu1  ;;  %v797_v47 = vpop.f32.mrb[55].mxu0 }
 0x1a0   : > { %1191 = vst [vmem:[%s2323_s24 + $0x370] sm:$0xff] %v1052_v46  ;;  %1190 = vst [vmem:[%s2323_s24 + $0x368] sm:$0xff] %v797_v47  ;;  %v1054_v48 = vpop.f32.mrb[55].mxu1 }
 0x1a1   : > { %1192 = vst [vmem:[%s2323_s24 + $0x378] sm:$0xff] %v1054_v48 }
 0x1a2   : > { %v801_v49 = vpop.f32.mrb[56].mxu0 }
 0x1a3   : > { %1193 = vst [vmem:[%s2323_s24 + $0x380] sm:$0xff] %v801_v49  ;;  %v1058_v50 = vpop.f32.mrb[56].mxu1  ;;  %v803_v51 = vpop.f32.mrb[57].mxu0 }
 0x1a4   : > { %1195 = vst [vmem:[%s2323_s24 + $0x390] sm:$0xff] %v1058_v50  ;;  %1194 = vst [vmem:[%s2323_s24 + $0x388] sm:$0xff] %v803_v51  ;;  %v1060_v52 = vpop.f32.mrb[57].mxu1 }
 0x1a5   : > { %1196 = vst [vmem:[%s2323_s24 + $0x398] sm:$0xff] %v1060_v52 }
 0x1a6   : > { %v807_v53 = vpop.f32.mrb[58].mxu0 }
 0x1a7   : > { %1197 = vst [vmem:[%s2323_s24 + $0x3a0] sm:$0xff] %v807_v53  ;;  %v1064_v54 = vpop.f32.mrb[58].mxu1  ;;  %v809_v55 = vpop.f32.mrb[59].mxu0 }
 0x1a8   : > { %1199 = vst [vmem:[%s2323_s24 + $0x3b0] sm:$0xff] %v1064_v54  ;;  %1198 = vst [vmem:[%s2323_s24 + $0x3a8] sm:$0xff] %v809_v55  ;;  %v1066_v56 = vpop.f32.mrb[59].mxu1 }
 0x1a9   : > { %1200 = vst [vmem:[%s2323_s24 + $0x3b8] sm:$0xff] %v1066_v56 }
 0x1aa   : > { %v813_v57 = vpop.f32.mrb[60].mxu0 }
 0x1ab   : > { %1201 = vst [vmem:[%s2323_s24 + $0x3c0] sm:$0xff] %v813_v57  ;;  %v1070_v58 = vpop.f32.mrb[60].mxu1  ;;  %v815_v59 = vpop.f32.mrb[61].mxu0 }
 0x1ac   : > { %1203 = vst [vmem:[%s2323_s24 + $0x3d0] sm:$0xff] %v1070_v58  ;;  %1202 = vst [vmem:[%s2323_s24 + $0x3c8] sm:$0xff] %v815_v59  ;;  %v1072_v60 = vpop.f32.mrb[61].mxu1 }
 0x1ad   : > { %1204 = vst [vmem:[%s2323_s24 + $0x3d8] sm:$0xff] %v1072_v60 }
 0x1ae   : > { %v819_v61 = vpop.f32.mrb[62].mxu0 }
 0x1af   : > { %1205 = vst [vmem:[%s2323_s24 + $0x3e0] sm:$0xff] %v819_v61  ;;  %v1076_v62 = vpop.f32.mrb[62].mxu1  ;;  %v821_v63 = vpop.f32.mrb[63].mxu0 }
 0x1b0   : > { %1207 = vst [vmem:[%s2323_s24 + $0x3f0] sm:$0xff] %v1076_v62  ;;  %1206 = vst [vmem:[%s2323_s24 + $0x3e8] sm:$0xff] %v821_v63  ;;  %v1078_v1 = vpop.f32.mrb[63].mxu1 }
 0x1b1   : > { %1208 = vst [vmem:[%s2323_s24 + $0x3f8] sm:$0xff] %v1078_v1 }
 0x1b2   : > { %1835 = shalt.err (!%p1832_p7)
}
 0x1b3   : > { %s1836_s17 = scalar_lea.hbm %s2455_s3, 16384  ;;  %s1840_s24 = scalar_lea.hbm %s2519_s2, 65536 }
 0x1b4   : > { %p1837_p9 = scmp.ne.s32.totalorder %s2455_s3, %s1836_s17  ;;  %p1841_p12 = scmp.lt.u32.totalorder %s2455_s3, %s2519_s2 }
 0x1b5   : > { %p1842_p13 = scmp.lt.u32.totalorder %s1840_s24, %s1836_s17  ;;  %p1844_p1 = scmp.lt.u32.totalorder %s1836_s17, %s2455_s3 }
 0x1b6   : > { %p1838_p10 = pnand %p1837_p9, %p1988_p3 }
 0x1b7   : > { %p1843_p0 = por %p1842_p13, %p1841_p12 }
 0x1b8   : > { %p1839_p11 = pneg %p1838_p10 }
 0x1b9   : > { %p1845_p2 = por %p1844_p1, %p1843_p0 }
 0x1bb   : > { %p1846_p4 = pnand %p1845_p2, %p1839_p11 }
 0x1bd   : > { %1849 = shalt.err (!%p1846_p4)
}
 0x1be   : > { %s1919_s28 = smov 512   ;;  %s1920_s29 = smov 1024  }
 0x1bf   : > { %s1921_s13 = smov 32  }
 0x1c0   : > { %1748 = dma.vmem_to_hbm [thread:$0]  (%p1988_p3), %s2457_s12, 16384, %s2455_s3, %s2465_s4, %s1919_s28, %s1920_s29, %s1921_s13  }
 0x1c1 PF: > { %p1754_p5 = scmp.ge.s32.totalorder %s1916_s16, 2  ;;  %s1241_s30 = sand.u32 1, %s1888_s9  }
 0x1c2   : > { %s1242_s5 = scalar_lea.sflag [#allocation3], %s1241_s30 }
 0x1c3   : > { %p1751_p6 = pnand %p1754_p5, %p1997_p8 }
 0x1c5   : > { %1883 = dma.done.wait (!%p1751_p6), %s1242_s5, 16384  }
 0x1c6   : > { %1885 = vsyncadd (!%p1751_p6), %s1242_s5, 4294950912  ;;  %s15_s16 = sadd.s32 1, %s1916_s16   ;;  %s2524_s9 = smov %s1892_s10 }
 0x1c7   : > { %p12_p7 = scmp.ge.s32.totalorder %s15_s16, 6   ;;  %s2525_s10 = smov %s1896_s11 }
 0x1c8   : > { %s2526_s11 = smov %s2006_s27  ;;  %s2527_s12 = smov %s1908_s14 }
 0x1c9   : > { %s2528_s13 = smov %s1912_s15  ;;  %s2529_s14 = smov %s2532_s19 }
 0x1ca   : > { %s2530_s15 = smov %s2536_s20  ;;  %14 = sbr.rel (!%p12_p7) target bundleno = 5 (0x5), region = 66 }
 0x1d1   :  { %1247 = vsyncpa [#allocation3], 1 }
 0x1d2   :  { %1249 = vsyncpa [#allocation3 + $0x1], 1 }

</bundles_post_ra>
